<compile_context>
chip_gen: v7x
topology: tpu7x:2x2x1
jax: 0.10.0
libtpu: 0.0.40
codegen_flags: <defaults>
</compile_context>

<pallas_src>
import inspect

import jax
import jax.numpy as jnp
from jax.experimental import pallas as pl
from jax.experimental.pallas import tpu as pltpu


_HAS_PIPELINE_MODE = "pipeline_mode" in inspect.signature(pl.BlockSpec).parameters


def _resident_spec(shape):
    """BlockSpec for a weight/bias held resident across the batch grid."""
    index_map = lambda i: (0,) * len(shape)
    if _HAS_PIPELINE_MODE:
        # Constant-index blocks need no double buffering; halves resident
        # weight VMEM if L1/L2 are scaled up (hits v7x's 64 MiB ceiling first).
        return pl.BlockSpec(shape, index_map, pipeline_mode=pl.Buffered(1))
    return pl.BlockSpec(shape, index_map)


def citeulike_kernel(x_ref, w1_ref, b1_ref, w2_ref, b2_ref, w3_ref, b3_ref,
                     out_ref):
    """One batch tile. x_ref: [Kp, TB] (features on sublanes, batch on lanes)."""
    # layer 1: [L1, Kp] @ [Kp, TB] -> f32 acc, + b1, ReLU  (concat fused into K)
    h1 = jnp.dot(w1_ref[...], x_ref[...], preferred_element_type=jnp.float32)
    h1 = jnp.maximum(h1 + b1_ref[...], 0.0)                          # [L1, TB]

    # layer 2: [L2, L1] @ [L1, TB] -> f32 acc, + b2, ReLU
    h2 = jnp.dot(w2_ref[...], h1.astype(w2_ref.dtype),
                 preferred_element_type=jnp.float32)
    h2 = jnp.maximum(h2 + b2_ref[...], 0.0)                          # [L2, TB]

    # output layer (N = 1): VPU multiply + sublane reduce instead of an MXU
    # push; the result is already lane-dense [1, TB].
    logits = jnp.sum(w3_ref[...] * h2, axis=0, keepdims=True) + b3_ref[0]
    out_ref[...] = jax.nn.sigmoid(logits).astype(out_ref.dtype)


def prepare_params(params, compute_dtype=jnp.bfloat16):
    """One-time static prep (hoisted out of the forward pass)."""
    K = params["w1"].shape[1]
    Kp = -(-K // 16) * 16   # sublane-friendly for both f32 (8) and bf16 (16)
    prep = dict(params)
    prep["w1"] = jnp.pad(params["w1"],
                         ((0, 0), (0, Kp - K))).astype(compute_dtype)
    prep["w2"] = params["w2"].astype(compute_dtype)
    prep["b1"] = params["b1"].astype(jnp.float32)
    prep["b2"] = params["b2"].astype(jnp.float32)
    prep["w3"] = params["w3"].astype(jnp.float32)
    prep["b3"] = params["b3"].reshape((1,)).astype(jnp.float32)   # 1-D SMEM
    prep["K"], prep["Kp"] = K, Kp
    prep["compute_dtype"] = compute_dtype
    return prep


def citeulike_forward(user_ids, text_ids, prep, *, batch_tile=2048):
    """Gather/mean glue in JAX; the MLP hot path in a single Pallas kernel."""
    # TODO(synk): fuse these gathers into the kernel at production scale (see
    # header); kept as wrapper glue so the kernel sees one feature-major slab.
    user = jnp.take(prep["user_emb"], user_ids, axis=0)              # [B, U]
    text = jnp.mean(jnp.take(prep["article_emb"], text_ids, axis=0),
                    axis=0)                                          # [B, E]
    # build the activation slab feature-major directly: batch -> lane axis
    x = jnp.concatenate((user.T, text.T), axis=0)                    # [K, B]

    K, Kp = prep["K"], prep["Kp"]
    B = x.shape[1]

    # batch tile: as big as allowed (multiple of 128), but keep >= 2 grid
    # steps when the batch is large enough so v7x can shard the "parallel"
    # axis across its two TensorCores.
    b_lanes = -(-B // 128) * 128
    TB = min(batch_tile, max(128, (b_lanes // 2) // 128 * 128))
    Bp = -(-B // TB) * TB

    x = jnp.pad(x, ((0, Kp - K), (0, Bp - B))).astype(prep["compute_dtype"])

    L1 = prep["w1"].shape[0]
    L2 = prep["w2"].shape[0]

    out = pl.pallas_call(
        citeulike_kernel,
        out_shape=jax.ShapeDtypeStruct((1, Bp), jnp.float32),
        grid_spec=pltpu.PrefetchScalarGridSpec(
            num_scalar_prefetch=0,
            grid=(Bp // TB,),
            in_specs=[
                pl.BlockSpec((Kp, TB), lambda i: (0, i)),   # x: batch-streamed
                _resident_spec((L1, Kp)),                   # w1 (resident)
                _resident_spec((L1, 1)),                    # b1
                _resident_spec((L2, L1)),                   # w2
                _resident_spec((L2, 1)),                    # b2
                _resident_spec((L2, 1)),                    # w3
                pl.BlockSpec(memory_space=pltpu.MemorySpace.SMEM),  # b3 (1,)
            ],
            out_specs=pl.BlockSpec((1, TB), lambda i: (0, i)),  # lane-dense out
        ),
        compiler_params=pltpu.CompilerParams(
            dimension_semantics=("parallel",),
            vmem_limit_bytes=32 * 1024 * 1024,
        ),
    )(x, prep["w1"], prep["b1"], prep["w2"], prep["b2"],
      prep["w3"], prep["b3"])

    return out[0, :B][:, None]                                       # [B, 1]


def make_params(key, num_articles, emb_dim, num_authors, user_dim, l1, l2):
    ks = jax.random.split(key, 8)
    # article embeddings: copied from text_vectors (synthetic here)
    article_emb = jax.random.normal(ks[0], (num_articles, emb_dim), jnp.float32)
    # user embeddings: uniform_(0, 200) as in the module
    user_emb = jax.random.uniform(ks[1], (num_authors, user_dim),
                                  jnp.float32, minval=0.0, maxval=200.0)
    in1 = user_dim + emb_dim
    # Linear weights in PyTorch [out, in] layout; concat order is (user, text).
    w1 = jax.random.normal(ks[2], (l1, in1), jnp.float32) * 0.05
    b1 = jax.random.normal(ks[3], (l1, 1), jnp.float32) * 0.05
    w2 = jax.random.normal(ks[4], (l2, l1), jnp.float32) * 0.05
    b2 = jax.random.normal(ks[5], (l2, 1), jnp.float32) * 0.05
    w3 = jax.random.normal(ks[6], (l2, 1), jnp.float32) * 0.05
    b3 = jax.random.normal(ks[7], (1, 1), jnp.float32) * 0.05
    return dict(article_emb=article_emb, user_emb=user_emb,
                w1=w1, b1=b1, w2=w2, b2=b2, w3=w3, b3=b3)


def reference_forward(user_ids, text_ids, params):
    user = jnp.take(params["user_emb"], user_ids, axis=0)
    text = jnp.mean(jnp.take(params["article_emb"], text_ids, axis=0), axis=0)
    x = jnp.concatenate((user, text), axis=1)                        # [B, U+E]
    h1 = jnp.maximum(x @ params["w1"].T + params["b1"].T, 0.0)
    h2 = jnp.maximum(h1 @ params["w2"].T + params["b2"].T, 0.0)
    return jax.nn.sigmoid(h2 @ params["w3"] + params["b3"])          # [B, 1]


if __name__ == "__main__":
    # Small shapes consistent with the module's forward.
    B = 200          # batch (pads to 256 -> 2 grid steps of 128)
    S = 8            # sequence length of article text
    E = 32           # embedding_dim (text_vectors.size(1))
    U = 16           # user_dim
    L1, L2 = 32, 32  # hidden layer sizes
    NUM_ARTICLES = 64
    NUM_AUTHORS = 20

    key = jax.random.PRNGKey(0)
    kp, ku, kt = jax.random.split(key, 3)

    params = make_params(kp, NUM_ARTICLES, E, NUM_AUTHORS, U, L1, L2)
    user_ids = jax.random.randint(ku, (B,), 0, NUM_AUTHORS)          # x.user
    text_ids = jax.random.randint(kt, (S, B), 0, NUM_ARTICLES)       # x.text

    ref = reference_forward(user_ids, text_ids, params)

    # exact-precision path: f32-streamed operands, tight check vs. reference
    out_f32 = citeulike_forward(user_ids, text_ids,
                                prepare_params(params, jnp.float32))
    jax.block_until_ready(out_f32)
    assert out_f32.shape == (B, 1), out_f32.shape
    assert jnp.allclose(out_f32, ref, atol=1e-4, rtol=1e-4), \
        float(jnp.max(jnp.abs(out_f32 - ref)))

    # default perf path: bf16-streamed x/w1/w2 with f32 MXU accumulation
    out_bf16 = citeulike_forward(user_ids, text_ids, prepare_params(params))
    jax.block_until_ready(out_bf16)
    assert out_bf16.shape == (B, 1), out_bf16.shape
    assert jnp.allclose(out_bf16, ref, atol=5e-2), \
        float(jnp.max(jnp.abs(out_bf16 - ref)))

    print("KERNEL_OK")
</pallas_src>

<mosaic_0001>
module attributes {stable_mosaic.version = 11 : i64} {
  func.func @citeulike_kernel(%arg0: i32, %arg1: memref<48x128xf32, #tpu.memory_space<vmem>>, %arg2: memref<32x48xf32, #tpu.memory_space<vmem>>, %arg3: memref<32x1xf32, #tpu.memory_space<vmem>>, %arg4: memref<32x32xf32, #tpu.memory_space<vmem>>, %arg5: memref<32x1xf32, #tpu.memory_space<vmem>>, %arg6: memref<32x1xf32, #tpu.memory_space<vmem>>, %arg7: memref<1xf32, #tpu.memory_space<smem>>, %arg8: memref<1x128xf32, #tpu.memory_space<vmem>>) attributes {dimension_semantics = [#tpu.dimension_semantics<parallel>], iteration_bounds = array<i64: 2>, scalar_prefetch = 0 : i64, scratch_operands = 0 : i64, tpu.core_type = #tpu.core_type<tc>, window_params = [{transform_indices = @transform_0, window_bounds = array<i64: 48, 128>}, {pipeline_mode = #tpu.pipeline_mode<synchronous>, transform_indices = @transform_1, window_bounds = array<i64: 32, 48>}, {pipeline_mode = #tpu.pipeline_mode<synchronous>, transform_indices = @transform_2, window_bounds = array<i64: 32, 1>}, {pipeline_mode = #tpu.pipeline_mode<synchronous>, transform_indices = @transform_3, window_bounds = array<i64: 32, 32>}, {pipeline_mode = #tpu.pipeline_mode<synchronous>, transform_indices = @transform_4, window_bounds = array<i64: 32, 1>}, {pipeline_mode = #tpu.pipeline_mode<synchronous>, transform_indices = @transform_5, window_bounds = array<i64: 32, 1>}, {transform_indices = @transform_6, window_bounds = array<i64: 1>}, {transform_indices = @transform_7, window_bounds = array<i64: 1, 128>}]} {
    %c0 = arith.constant 0 : index
    %c0_0 = arith.constant 0 : index
    %0 = vector.load %arg2[%c0, %c0_0] : memref<32x48xf32, #tpu.memory_space<vmem>>, vector<32x48xf32>
    %c0_1 = arith.constant 0 : index
    %c0_2 = arith.constant 0 : index
    %1 = vector.load %arg1[%c0_1, %c0_2] : memref<48x128xf32, #tpu.memory_space<vmem>>, vector<48x128xf32>
    %cst = arith.constant dense<0.000000e+00> : vector<32x128xf32>
    %2 = tpu.matmul %0, %1, %cst {dimension_numbers = #tpu.dot_dimension_numbers<[1], [0], [0], [1], [0, 0, 1, 1], [], []>} : vector<32x48xf32>, vector<48x128xf32>, vector<32x128xf32> -> vector<32x128xf32>
    %c0_3 = arith.constant 0 : index
    %c0_4 = arith.constant 0 : index
    %3 = vector.load %arg3[%c0_3, %c0_4] : memref<32x1xf32, #tpu.memory_space<vmem>>, vector<32x1xf32>
    %4 = vector.broadcast %3 : vector<32x1xf32> to vector<32x128xf32>
    %5 = arith.addf %2, %4 : vector<32x128xf32>
    %cst_5 = arith.constant 0.000000e+00 : f32
    %6 = vector.broadcast %cst_5 : f32 to vector<32x128xf32>
    %7 = arith.maximumf %5, %6 : vector<32x128xf32>
    %c0_6 = arith.constant 0 : index
    %c0_7 = arith.constant 0 : index
    %8 = vector.load %arg4[%c0_6, %c0_7] : memref<32x32xf32, #tpu.memory_space<vmem>>, vector<32x32xf32>
    %cst_8 = arith.constant dense<0.000000e+00> : vector<32x128xf32>
    %9 = tpu.matmul %8, %7, %cst_8 {dimension_numbers = #tpu.dot_dimension_numbers<[1], [0], [0], [1], [0, 0, 1, 1], [], []>} : vector<32x32xf32>, vector<32x128xf32>, vector<32x128xf32> -> vector<32x128xf32>
    %c0_9 = arith.constant 0 : index
    %c0_10 = arith.constant 0 : index
    %10 = vector.load %arg5[%c0_9, %c0_10] : memref<32x1xf32, #tpu.memory_space<vmem>>, vector<32x1xf32>
    %11 = vector.broadcast %10 : vector<32x1xf32> to vector<32x128xf32>
    %12 = arith.addf %9, %11 : vector<32x128xf32>
    %cst_11 = arith.constant 0.000000e+00 : f32
    %13 = vector.broadcast %cst_11 : f32 to vector<32x128xf32>
    %14 = arith.maximumf %12, %13 : vector<32x128xf32>
    %c0_12 = arith.constant 0 : index
    %c0_13 = arith.constant 0 : index
    %15 = vector.load %arg6[%c0_12, %c0_13] : memref<32x1xf32, #tpu.memory_space<vmem>>, vector<32x1xf32>
    %16 = vector.broadcast %15 : vector<32x1xf32> to vector<32x128xf32>
    %17 = arith.mulf %16, %14 : vector<32x128xf32>
    %cst_14 = arith.constant dense<0.000000e+00> : vector<128xf32>
    %18 = vector.multi_reduction <add>, %17, %cst_14 [0] : vector<32x128xf32> to vector<128xf32>
    %19 = vector.shape_cast %18 : vector<128xf32> to vector<1x128xf32>
    %c0_15 = arith.constant 0 : index
    %20 = memref.load %arg7[%c0_15] : memref<1xf32, #tpu.memory_space<smem>>
    %21 = vector.broadcast %20 : f32 to vector<1x128xf32>
    %22 = arith.addf %19, %21 : vector<1x128xf32>
    %23 = arith.negf %22 : vector<1x128xf32>
    %24 = math.exp %23 : vector<1x128xf32>
    %cst_16 = arith.constant 1.000000e+00 : f32
    %25 = vector.broadcast %cst_16 : f32 to vector<1x128xf32>
    %26 = arith.addf %25, %24 : vector<1x128xf32>
    %27 = arith.divf %25, %26 : vector<1x128xf32>
    %c0_17 = arith.constant 0 : index
    %c0_18 = arith.constant 0 : index
    %28 = vector.load %arg8[%c0_17, %c0_18] : memref<1x128xf32, #tpu.memory_space<vmem>>, vector<1x128xf32>
    tpu.vector_store %arg8[%c0_17, %c0_18], %27 {strides = array<i32>} : memref<1x128xf32, #tpu.memory_space<vmem>>, vector<1x128xf32>,
    return
  }
  func.func @transform_0(%arg0: i32) -> (i32, i32) {
    %c0_i32 = arith.constant 0 : i32
    %c0_i32_0 = arith.constant 0 : i32
    return %c0_i32, %arg0 : i32, i32
  }
  func.func @transform_1(%arg0: i32) -> (i32, i32) {
    %c0_i32 = arith.constant 0 : i32
    %c0_i32_0 = arith.constant 0 : i32
    %c0_i32_1 = arith.constant 0 : i32
    return %c0_i32, %c0_i32_0 : i32, i32
  }
  func.func @transform_2(%arg0: i32) -> (i32, i32) {
    %c0_i32 = arith.constant 0 : i32
    %c0_i32_0 = arith.constant 0 : i32
    %c0_i32_1 = arith.constant 0 : i32
    return %c0_i32, %c0_i32_0 : i32, i32
  }
  func.func @transform_3(%arg0: i32) -> (i32, i32) {
    %c0_i32 = arith.constant 0 : i32
    %c0_i32_0 = arith.constant 0 : i32
    %c0_i32_1 = arith.constant 0 : i32
    return %c0_i32, %c0_i32_0 : i32, i32
  }
  func.func @transform_4(%arg0: i32) -> (i32, i32) {
    %c0_i32 = arith.constant 0 : i32
    %c0_i32_0 = arith.constant 0 : i32
    %c0_i32_1 = arith.constant 0 : i32
    return %c0_i32, %c0_i32_0 : i32, i32
  }
  func.func @transform_5(%arg0: i32) -> (i32, i32) {
    %c0_i32 = arith.constant 0 : i32
    %c0_i32_0 = arith.constant 0 : i32
    %c0_i32_1 = arith.constant 0 : i32
    return %c0_i32, %c0_i32_0 : i32, i32
  }
  func.func @transform_6(%arg0: i32) -> i32 {
    %c0_i32 = arith.constant 0 : i32
    %c0_i32_0 = arith.constant 0 : i32
    return %c0_i32 : i32
  }
  func.func @transform_7(%arg0: i32) -> (i32, i32) {
    %c0_i32 = arith.constant 0 : i32
    %c0_i32_0 = arith.constant 0 : i32
    return %c0_i32, %arg0 : i32, i32
  }
}

</mosaic_0001>

<bundles_post_ra>
// kernel: tpu_custom_call.1
= control target key start
LH: loop header
LB: loop body
LE: loop exit
PB: predicated region body
PF: predicated region fallthrough
CT: control target
= control target key end

     0   :  { %s1341_s0 = inlined_call_operand.vmem [shape: f32[48,256], index: 0, kind: input, shape index: {}]   ;;  %s1342_s1 = inlined_call_operand.hbm [shape: f32[32,48], index: 1, kind: input, shape index: {}]   ;;  %s1343_s2 = inlined_call_operand.vmem [shape: f32[32,1], index: 2, kind: input, shape index: {}]   ;;  %s1344_s3 = inlined_call_operand.hbm [shape: f32[32,32], index: 3, kind: input, shape index: {}]   ;;  %s1345_s4 = inlined_call_operand.vmem [shape: f32[32,1], index: 4, kind: input, shape index: {}]   ;;  %s1346_s5 = inlined_call_operand.vmem [shape: f32[32,1], index: 5, kind: input, shape index: {}]   ;;  %s1347_s6 = inlined_call_operand.<no memory space> [shape: f32[1], index: 6, kind: input, shape index: {}]   ;;  %s1348_s7 = inlined_call_operand.hbm [shape: f32[1,256], index: 7, kind: output, shape index: {}]  }
   0x1   :  { %12 = sst [smem:[#allocation2]] %s1347_s6 }
   0x2   :  { %13 = vsyncpa [#allocation5], 0 }
   0x3   :  { %14 = vsyncpa [#allocation8], 0 }
   0x4   :  { %15 = vsyncpa [#allocation6], 0 }
   0x5   :  { %17 = vsyncpa [#allocation6 + $0x1], 0  ;;  %s1109_s26 = smov 0   ;;  %s1111_s27 = smov 0  }
   0x6   :  { %s1113_s28 = smov 0   ;;  %s1115_s29 = smov 0  }
   0x7 LB: > { %s1130_s6 = sadd.s32 4294967295, %s1058_s29   ;;  %s770_s30 = sadd.s32 4294967294, %s1058_s29   ;;  %s1058_s29 = sphi %s1115_s29, %s1370_s29   ;;  %s1054_s28 = sphi %s1113_s28, %s1369_s28   ;;  %s1050_s27 = sphi %s1111_s27, %s1368_s27   ;;  %s1046_s26 = sphi %s1109_s26, %s1367_s26  }
   0x8   : > { %s1134_s8 = sadd.s32 1, %s1058_s29   ;;  %s30_s9 = sadd.s32 1, %s1054_s28 }
   0x9   : > { %s27_s10 = ssub.s32 %s1058_s29, %s1134_s8  ;;  %p37_p0 = scmp.ne.s32.totalorder %s1054_s28, %s1050_s27 }
   0xa   : > { %p28_p1 = scmp.eq.s32.totalorder %s27_s10, 0  ;;  %p38_p2 = scmp.eq.s32.totalorder %s1058_s29, 0 }
   0xb   : > { %p193_p3 = scmp.eq.s32.totalorder %s1130_s6, 1  ;;  %p198_p4 = scmp.ne.s32.totalorder %s1050_s27, %s1046_s26 }
   0xc   : > { %s1146_s11 = scalar_select %p28_p1, %s1054_s28, %s30_s9  }
   0xd   : > { %p1148_p5 = por %p38_p2, %p37_p0  ;;  %p1152_p6 = por %p193_p3, %p37_p0 }
   0xe   : > { %1352 = sst [smem:[#allocation13_spill]] %s1146_s11  ;;  %p199_p7 = scmp.eq.s32.totalorder %s770_s30, 1 }
   0xf   : > { %s1353_s12 = scalar_select %p1148_p5, 1, 0 }
  0x10   : > { %s1354_s13 = scalar_select %p1152_p6, 1, 0 }
  0x11   : > { %p771_p8 = scmp.ge.s32.totalorder %s1058_s29, 1  ;;  %p206_p9 = scmp.lt.s32.totalorder %s1058_s29, 3 }
  0x12   : > { %p1158_p10 = por %p199_p7, %p198_p4  ;;  %p1349_p11 = scmp.eq.s32.totalorder %s1130_s6, 0 }
  0x13   : > { %p1163_p12 = pnand %p771_p8, %p206_p9  ;;  %s1060_s16 = smov [#allocation4]  }
  0x14   : > { %s1355_s14 = scalar_select %p1158_p10, 1, 0 }
  0x15   : > { %s1356_s15 = scalar_select %p1163_p12, 1, 0 }
  0x16   : > { %s218_s17 = sshll.u32 %s1060_s16, 4  ;;  %p873_p13 = pneg %p1163_p12  ;;  %s219_s17 = int_to_ptr.vmem [resolvable:$true] %s218_s17 }
  0x17   : > { %s1061_s19 = smov [#allocation7]   ;;  %s932_s23 = scalar_lea.hbm %s1342_s1, 512 }
  0x18   : > { %p1171_p0 = pnand %p1349_p11, %p873_p13  ;;  %s234_s20 = sshll.u32 %s1061_s19, 4  ;;  %s1175_s20 = int_to_ptr.vmem [resolvable:$true] %s234_s20 }
  0x19   : > { %p933_p1 = scmp.ne.s32.totalorder %s1342_s1, %s932_s23  ;;  %p939_p7 = scmp.lt.u32.totalorder %s932_s23, %s1342_s1 }
  0x1a   : > { %p934_p2 = pneg %p1171_p0 }
  0x1c   : > { %p935_p3 = pnand %p934_p2, %p933_p1 }
  0x1e   : > { %p936_p4 = pneg %p935_p3 }
  0x20   : > { %p941_p8 = pnand %p939_p7, %p936_p4 }
  0x22   : > { %944 = shalt.err (!%p941_p8)
}
  0x23   : > { %s945_s10 = scalar_lea.vmem %s219_s17, 512  ;;  %p953_p10 = scmp.lt.s32.totalorder %s219_s17, %s219_s17 }
  0x24   : > { %p946_p9 = scmp.ne.s32.totalorder %s219_s17, %s945_s10  ;;  %p954_p6 = scmp.lt.s32.totalorder %s945_s10, %s945_s10 }
  0x26   : > { %p948_p13 = pnand %p946_p9, %p934_p2  ;;  %p955_p12 = por %p954_p6, %p953_p10 }
  0x28   : > { %p949_p11 = pneg %p948_p13 }
  0x2a   : > { %p956_p5 = pnand %p955_p12, %p949_p11 }
  0x2c   : > { %959 = shalt.err (!%p956_p5)
}
  0x2d   : > { %s1062_s16 = smov 128   ;;  %s1063_s19 = smov 8  }
  0x2e   : > { %876 = dma.hbm_to_vmem [thread:$0]  (!%p1171_p0), %s1342_s1, 512, %s219_s17, [#allocation5], %s1062_s16, %s1062_s16, %s1063_s19  }
  0x2f   : > { %s960_s25 = scalar_lea.hbm %s1344_s3, 512 }
  0x30   : > { %p961_p1 = scmp.ne.s32.totalorder %s1344_s3, %s960_s25  ;;  %p967_p10 = scmp.lt.u32.totalorder %s960_s25, %s1344_s3 }
  0x32   : > { %p963_p5 = pnand %p961_p1, %p934_p2 }
  0x34   : > { %p964_p6 = pneg %p963_p5 }
  0x36   : > { %p969_p11 = pnand %p967_p10, %p964_p6 }
  0x38   : > { %972 = shalt.err (!%p969_p11)
}
  0x39   : > { %s973_s17 = scalar_lea.vmem %s1175_s20, 512  ;;  %p981_p7 = scmp.lt.s32.totalorder %s1175_s20, %s1175_s20 }
  0x3a   : > { %p974_p12 = scmp.ne.s32.totalorder %s1175_s20, %s973_s17  ;;  %p982_p8 = scmp.lt.s32.totalorder %s973_s17, %s973_s17 }
  0x3c   : > { %p976_p3 = pnand %p974_p12, %p934_p2  ;;  %p983_p9 = por %p982_p8, %p981_p7 }
  0x3e   : > { %p977_p4 = pneg %p976_p3 }
  0x40   : > { %p984_p13 = pnand %p983_p9, %p977_p4 }
  0x42   : > { %987 = shalt.err (!%p984_p13)
}
  0x43   : > { %879 = dma.hbm_to_vmem [thread:$0]  (!%p1171_p0), %s1344_s3, 512, %s1175_s20, [#allocation8], %s1062_s16, %s1062_s16, %s1063_s19  }
  0x44   : > { %p774_p1 = scmp.ge.s32.totalorder %s1058_s29, 2 }
  0x45   : > { %p1358_p2 = scmp.ne.s32.totalorder (!%p774_p1), %s1353_s12, 0 }
  0x46   : > { %253 = sbr.rel (%p774_p1) target bundleno = 84 (0x54), region = 40 }
  0x4d   : > { %256 = sbr.rel (!%p1358_p2) target bundleno = 84 (0x54), region = 44  ;;  %s258_s22 = sand.u32 (%p1358_p2), 1, %s1054_s28  }
  0x4e   : > { %s775_s23 = sshll.u32 (%p1358_p2), %s1058_s29, 3  ;;  %s861_s24 = smul.u32 (%p1358_p2), 48, %s258_s22 }
  0x4f   : > { %s262_s30 = scalar_lea.vmem (%p1358_p2), %s1341_s0, %s775_s23 }
  0x50   : > { %v300_v0 = vld [vmem:[%s262_s30] sm:$0xff] (%p1358_p2)  ;;  %v302_v1 = vld [vmem:[%s262_s30 + $0x10] sm:$0xff] (%p1358_p2)  ;;  %s260_s20 = scalar_lea.vmem (%p1358_p2), [#allocation3], %s861_s24 }
  0x51   : > { %v304_v2 = vld [vmem:[%s262_s30 + $0x20] sm:$0xff] (%p1358_p2)  ;;  %v306_v3 = vld [vmem:[%s262_s30 + $0x30] sm:$0xff] (%p1358_p2)  ;;  %301 = vst [vmem:[%s260_s20] sm:$0xff] (%p1358_p2), %v300_v0  ;;  %303 = vst [vmem:[%s260_s20 + $0x8] sm:$0xff] (%p1358_p2), %v302_v1 }
  0x52   : > { %v308_v4 = vld [vmem:[%s262_s30 + $0x40] sm:$0xff] (%p1358_p2)  ;;  %v310_v5 = vld [vmem:[%s262_s30 + $0x50] sm:$0xff] (%p1358_p2)  ;;  %305 = vst [vmem:[%s260_s20 + $0x10] sm:$0xff] (%p1358_p2), %v304_v2  ;;  %307 = vst [vmem:[%s260_s20 + $0x18] sm:$0xff] (%p1358_p2), %v306_v3 }
  0x53   : > { %309 = vst [vmem:[%s260_s20 + $0x20] sm:$0xff] (%p1358_p2), %v308_v4  ;;  %311 = vst [vmem:[%s260_s20 + $0x28] sm:$0xff] (%p1358_p2), %v310_v5 }
  0x54 PF: > { %p1359_p0 = scmp.ne.s32.totalorder %s1356_s15, 0 }
  0x55   : > { %s1237_s12 = sand.u32 (!%p1359_p0), 1, %s1050_s27   ;;  %p1360_p5 = scmp.eq.s32.totalorder (!%p1359_p0), %s1130_s6, 0 }
  0x56   : > { %320 = sbr.rel (%p1359_p0) target bundleno = 620 (0x26c), region = 82 }
  0x57   : > { %s862_s16 = smul.u32 (!%p1359_p0), 48, %s1237_s12 }
  0x59   : > { %s325_s19 = scalar_lea.vmem (!%p1359_p0), [#allocation3], %s862_s16 }
  0x5d   : > { %1033 = dma.done.wait (%p1360_p5), [#allocation5], 512   ;;  %p1361_p6 = pmov %p1360_p5 }
  0x5e   : > { %p1362_p10 = pmov %p1360_p5 }
  0x5f   : > { %1035 = vsyncadd (%p1361_p6), [#allocation5], 4294966784 }
  0x60   : > { %1037 = dma.done.wait (%p1362_p10), [#allocation8], 512   ;;  %p1363_p11 = pmov %p1360_p5 }
  0x61   : > { %v1064_v6 = vmov 0   ;;  %v365_v7 = vld [vmem:[%s325_s19] sm:$0xff]  ;;  %v366_v8 = vld [vmem:[%s325_s19 + $0x8] sm:$0xff]  ;;  %v367_v9 = vld [vmem:[%s325_s19 + $0x10] sm:$0xff]  ;;  %vm395_vm0 = vcmask 392192   ;;  %vm525_vm1 = vcmask 261120  }
  0x62   : > { %1039 = vsyncadd (%p1363_p11), [#allocation8], 4294966784  ;;  %926 = vset.pattern.permute.xlu0 %v1064_v6  ;;  %927 = vset.pattern.permute.xlu1 %v1064_v6  ;;  %v841_v10 = vpack.c.bf16 %v366_v8, %v365_v7  ;;  %v368_v11 = vld [vmem:[%s325_s19 + $0x18] sm:$0xff]  ;;  %v369_v13 = vld [vmem:[%s325_s19 + $0x20] sm:$0xff]  ;;  %s664_s25 = sld [smem:[#allocation2]]  ;;  %s788_s18 = sshll.u32 %s1130_s6, 4 }
  0x63   : > { %v845_v12 = vpack.c.bf16 %v368_v11, %v367_v9  ;;  %v370_v14 = vld [vmem:[%s325_s19 + $0x28] sm:$0xff]  ;;  %v361_v15 = vld [vmem:[#allocation4] sm:$0xff]  ;;  %v373_v17 = vld [vmem:[%s1343_s2 + $0x10] sm:$0xff]  ;;  %s360_s30 = scalar_lea.vmem [#allocation9], %s1237_s12  ;;  %s1297_s15 = scalar_lea.hbm %s1348_s7, %s788_s18 }
  0x64   : > { %842 = vmatprep.subr.bf16.mxu0 %v841_v10  ;;  %821 = vmatprep.mubr.msk.f32.mxu0 %vm395_vm0, %v361_v15  ;;  %v371_v16 = vld [vmem:[%s1343_s2] sm:$0xff]  ;;  %v849_v18 = vpack.c.bf16 %v370_v14, %v369_v13  ;;  %v372_v19 = vld [vmem:[%s1343_s2 + $0x8] sm:$0xff]  ;;  %v374_v20 = vld [vmem:[%s1343_s2 + $0x18] sm:$0xff]  ;;  %s687_s20 = sshll.u32 %s360_s30, 4  ;;  %s675_s9 = scalar_lea.sflag [#allocation6], %s1237_s12  ;;  %s1299_s20 = int_to_ptr.vmem [resolvable:$true] %s687_s20 }
  0x65   : > { %844 = vmatpush3.bf16.msra.mxu0 %v841_v10  ;;  %377 = vperm.xlu0 %926, %v371_v16   ;;  %v501_v21 = vld [vmem:[%s1345_s4] sm:$0xff]  ;;  %v502_v22 = vld [vmem:[%s1345_s4 + $0x8] sm:$0xff]  ;;  %v363_v24 = vld [vmem:[#allocation4 + $0x10] sm:$0xff]  ;;  %s988_s10 = scalar_lea.vmem %s1299_s20, 16  ;;  %p1364_p3 = scmp.ne.s32.totalorder %s1354_s13, 0 }
  0x66   : > { %846 = vmatprep.subr.bf16.mxu0 %v845_v12  ;;  %387 = vperm.xlu1 %927, %v373_v17   ;;  %v362_v23 = vld [vmem:[#allocation4 + $0x8] sm:$0xff]  ;;  %v503_v25 = vld [vmem:[%s1345_s4 + $0x10] sm:$0xff]  ;;  %v504_v26 = vld [vmem:[%s1345_s4 + $0x18] sm:$0xff]  ;;  %p989_p12 = scmp.ne.s32.totalorder %s1299_s20, %s988_s10  ;;  %s1065_s6 = smov [#allocation9]  }
  0x67   : > { %v364_v27 = vld [vmem:[#allocation4 + $0x18] sm:$0xff]  ;;  %v627_v28 = vld [vmem:[%s1346_s5] sm:$0xff]  ;;  %v628_v29 = vld [vmem:[%s1346_s5 + $0x8] sm:$0xff]  ;;  %s992_s17 = sshll.u32 %s1065_s6, 4  ;;  %s993_s17 = int_to_ptr.vmem [resolvable:$false] %s992_s17 }
  0x68   : > { %v629_v30 = vld [vmem:[%s1346_s5 + $0x10] sm:$0xff]  ;;  %v630_v31 = vld [vmem:[%s1346_s5 + $0x18] sm:$0xff]  ;;  %v497_v32 = vld [vmem:[#allocation7] sm:$0xff]  ;;  %p990_p4 = pnand %p989_p12, %p1364_p3  ;;  %s994_s11 = scalar_lea.vmem %s993_s17, 32 }
  0x69   : > { %848 = vmatpush3.bf16.msra.mxu0 %v845_v12  ;;  %382 = vperm.xlu0 %926, %v372_v19   ;;  %v498_v51 = vld [vmem:[#allocation7 + $0x8] sm:$0xff]  ;;  %v499_v52 = vld [vmem:[#allocation7 + $0x10] sm:$0xff]  ;;  %v500_v53 = vld [vmem:[#allocation7 + $0x18] sm:$0xff]  ;;  %p995_p8 = scmp.lt.s32.totalorder %s1299_s20, %s993_s17  ;;  %p996_p9 = scmp.lt.s32.totalorder %s994_s11, %s988_s10 }
  0x6a   : > { %850 = vmatprep.subr.bf16.mxu0 %v849_v18  ;;  %392 = vperm.xlu1 %927, %v374_v20   ;;  %p991_p7 = pneg %p990_p4 }
  0x6b   : > { %835 = vmatprep.mubr.msk.f32.mxu1 %vm525_vm1, %v497_v32  ;;  %p997_p13 = por %p996_p9, %p995_p8 }
  0x6d   : > { %852 = vmatpush3.bf16.msra.mxu0 %v849_v18  ;;  %507 = vperm.xlu0 %926, %v501_v21   ;;  %p998_p2 = pnand %p997_p13, %p991_p7 }
  0x6e   : > { %512 = vperm.xlu1 %927, %v502_v22   ;;  %v665_v22 = vstv %s664_s25 }
  0x70   : > { %822 = vmatmul.mubr.msk.f32.vlgmr.msra.gmra.mrb[0].mxu0 %vm395_vm0, %v362_v23 }
  0x71   : > { %824 = vmatprep.mubr.msk.f32.mxu0 %vm395_vm0, %v363_v24  ;;  %517 = vperm.xlu0 %926, %v503_v25  }
  0x72   : > { %522 = vperm.xlu1 %927, %v504_v26  }
  0x74   : > { %825 = vmatmul.mubr.msk.f32.gmra.mrb[2].mxu0 %vm395_vm0, %v364_v27 }
  0x75   : > { %633 = vperm.xlu0 %926, %v627_v28  }
  0x76   : > { %638 = vperm.xlu1 %927, %v628_v29  }
  0x79   : > { %643 = vperm.xlu0 %926, %v629_v30  }
  0x7a   : > { %648 = vperm.xlu1 %927, %v630_v31  }
  0xe4   : > { %v378_v33 = vpop.permute.xlu0 %377 }
  0xe5   : > { %v388_v34 = vpop.permute.xlu1 %387 }
  0xe8   : > { %v383_v35 = vpop.permute.xlu0 %382 }
  0xe9   : > { %v393_v41 = vpop.permute.xlu1 %392 }
  0xec   : > { %v508_v54 = vpop.permute.xlu0 %507 }
  0xed   : > { %v513_v55 = vpop.permute.xlu1 %512 }
  0xf0   : > { %v518_v56 = vpop.permute.xlu0 %517 }
  0xf1   : > { %v523_v57 = vpop.permute.xlu1 %522 }
  0xf4   : > { %v634_v62 = vpop.permute.xlu0 %633 }
  0xf5   : > { %v639_v0 = vpop.permute.xlu1 %638 }
  0xf8   : > { %v644_v11 = vpop.permute.xlu0 %643 }
  0xf9   : > { %v649_v13 = vpop.permute.xlu1 %648 }
 0x143   : > { %v823_v36 = vpop.f32.mrb[0].mxu0 }
 0x144   : > { %v480_v37 = vadd.f32 %v823_v36, %v383_v35  ;;  %v474_v38 = vpop.f32.mrb[1].mxu0 }
 0x145   : > { %v475_v39 = vadd.f32 %v474_v38, %v378_v33 }
 0x146   : > { %v494_v40 = vmax.f32 %v480_v37, 0.0 }
 0x147   : > { %v493_v42 = vmax.f32 %v475_v39, 0.0  ;;  %v826_v43 = vpop.f32.mrb[2].mxu0 }
 0x148   : > { %v490_v44 = vadd.f32 %v826_v43, %v393_v41  ;;  %v484_v45 = vpop.f32.mrb[3].mxu0 }
 0x149   : > { %v485_v46 = vadd.f32 %v484_v45, %v388_v34  ;;  %v853_v47 = vpack.c.bf16 %v494_v40, %v493_v42 }
 0x14a   : > { %v496_v48 = vmax.f32 %v490_v44, 0.0 }
 0x14b   : > { %v495_v49 = vmax.f32 %v485_v46, 0.0  ;;  %854 = vmatprep.subr.bf16.mxu1 %v853_v47 }
 0x14c   : > { %856 = vmatpush3.bf16.msra.mxu1 %v853_v47 }
 0x14d   : > { %v857_v50 = vpack.c.bf16 %v496_v48, %v495_v49 }
 0x14f   : > { %858 = vmatprep.subr.bf16.mxu1 %v857_v50 }
 0x150   : > { %860 = vmatpush3.bf16.msra.mxu1 %v857_v50 }
 0x153   : > { %836 = vmatmul.mubr.msk.f32.vlgmr.msra.gmra.mrb[0].mxu1 %vm525_vm1, %v498_v51 }
 0x154   : > { %838 = vmatprep.mubr.msk.f32.mxu1 %vm525_vm1, %v499_v52 }
 0x157   : > { %839 = vmatmul.mubr.msk.f32.gmra.mrb[2].mxu1 %vm525_vm1, %v500_v53 }
 0x226   : > { %v837_v58 = vpop.f32.mrb[0].mxu1 }
 0x227   : > { %v610_v59 = vadd.f32 %v837_v58, %v513_v55  ;;  %v604_v60 = vpop.f32.mrb[1].mxu1 }
 0x228   : > { %v605_v61 = vadd.f32 %v604_v60, %v508_v54 }
 0x229   : > { %v624_v63 = vmax.f32 %v610_v59, 0.0 }
 0x22a   : > { %v623_v1 = vmax.f32 %v605_v61, 0.0  ;;  %v840_v2 = vpop.f32.mrb[2].mxu1 }
 0x22b   : > { %v652_v3 = vmul.f32 %v639_v0, %v624_v63  ;;  %v620_v4 = vadd.f32 %v840_v2, %v523_v57  ;;  %v614_v5 = vpop.f32.mrb[3].mxu1 }
 0x22c   : > { %v651_v6 = vmul.f32 %v634_v62, %v623_v1  ;;  %v615_v7 = vadd.f32 %v614_v5, %v518_v56 }
 0x22d   : > { %v626_v9 = vmax.f32 %v620_v4, 0.0 }
 0x22e   : > { %v655_v8 = vadd.f32 %v652_v3, %v651_v6  ;;  %v625_v10 = vmax.f32 %v615_v7, 0.0 }
 0x22f   : > { %v654_v14 = vmul.f32 %v649_v13, %v626_v9 }
 0x230   : > { %v653_v12 = vmul.f32 %v644_v11, %v625_v10 }
 0x232   : > { %v656_v15 = vadd.f32 %v655_v8, %v653_v12 }
 0x234   : > { %v657_v16 = vadd.f32 %v656_v15, %v654_v14 }
 0x236   : > { %v658_v17 = vrot.slane %v657_v16, 4 }
 0x238   : > { %v659_v18 = vadd.f32 %v658_v17, %v657_v16 }
 0x23a   : > { %v660_v19 = vrot.slane %v659_v18, 2 }
 0x23c   : > { %v661_v20 = vadd.f32 %v660_v19, %v659_v18 }
 0x23e   : > { %v662_v21 = vrot.slane %v661_v20, 1 }
 0x240   : > { %v663_v23 = vadd.f32 %v662_v21, %v661_v20 }
 0x242   : > { %v666_v24 = vadd.f32 %v665_v22, %v663_v23 }
 0x244   : > { %v787_v25 = vmul.f32 -1.442695, %v666_v24 }
 0x246   : > { %928 = vpow2.f32 %v787_v25 }
 0x250   : > { %v929_v26 = vpop.eup %928 }
 0x251   : > { %v670_v27 = vadd.f32 1.0, %v929_v26 }
 0x253   : > { %930 = vrcp.f32 %v670_v27 }
 0x25d   : > { %v931_v28 = vpop.eup %930 }
 0x25e   : > { %673 = vst [vmem:[%s360_s30] sm:$0x1] %v931_v28 }
 0x25f   : > { %1001 = shalt.err (!%p998_p2)
}
 0x260   : > { %s1002_s12 = scalar_lea.hbm %s1297_s15, 16  ;;  %s1006_s23 = scalar_lea.hbm %s1348_s7, 32 }
 0x261   : > { %p1003_p0 = scmp.ne.s32.totalorder %s1297_s15, %s1002_s12  ;;  %p1007_p10 = scmp.lt.u32.totalorder %s1297_s15, %s1348_s7 }
 0x262   : > { %p1008_p11 = scmp.lt.u32.totalorder %s1006_s23, %s1002_s12  ;;  %p1010_p4 = scmp.lt.u32.totalorder %s1002_s12, %s1297_s15 }
 0x263   : > { %p1004_p5 = pnand %p1003_p0, %p1364_p3 }
 0x264   : > { %p1009_p12 = por %p1008_p11, %p1007_p10 }
 0x265   : > { %p1005_p6 = pneg %p1004_p5 }
 0x266   : > { %p1011_p7 = por %p1010_p4, %p1009_p12 }
 0x268   : > { %p1012_p8 = pnand %p1011_p7, %p1005_p6 }
 0x26a   : > { %1015 = shalt.err (!%p1012_p8)
}
 0x26b   : > { %871 = dma.vmem_to_hbm [thread:$0]  (%p1364_p3), %s1299_s20, 16, %s1297_s15, %s675_s9  }
 0x26c PF: > { %s699_s18 = sand.u32 1, %s1046_s26   ;;  %p1365_p9 = scmp.ne.s32.totalorder %s1355_s14, 0 }
 0x26d   : > { %s700_s30 = scalar_lea.sflag [#allocation6], %s699_s18 }
 0x26e   : > { %p881_p13 = pnand %p774_p1, %p1365_p9 }
 0x270   : > { %1041 = dma.done.wait (!%p881_p13), %s700_s30, 16  }
 0x271   : > { %1043 = vsyncadd (!%p881_p13), %s700_s30, 4294967280  ;;  %s1366_s16 = sld [smem:[#allocation13_spill]]  ;;  %p20_p2 = scmp.ge.s32.totalorder %s1134_s8, 4  }
 0x272   : > { %s1367_s26 = smov %s1050_s27  ;;  %s1368_s27 = smov %s1054_s28 }
 0x273   : > { %s1370_s29 = smov %s1134_s8  ;;  %22 = sbr.rel (!%p20_p2) target bundleno = 7 (0x7), region = 135 }
 0x277   : > { %s1369_s28 = smov %s1366_s16 }
 0x27a   :  { %704 = vsyncpa [#allocation5], 1 }
 0x27b   :  { %706 = vsyncpa [#allocation5 + $0x1], 1 }
 0x27c   :  { %707 = vsyncpa [#allocation8], 1 }
 0x27d   :  { %708 = vsyncpa [#allocation6], 1 }
 0x27e   :  { %710 = vsyncpa [#allocation6 + $0x1], 1 }

</bundles_post_ra>
